<compile_context>
chip_gen: v6e
topology: v6e:2x2x1
jax: 0.10.0
libtpu: 0.0.40
codegen_flags: <defaults>
</compile_context>

<pallas_src>
import functools

import jax
import jax.numpy as jnp
from jax import lax
from jax.experimental import pallas as pl
from jax.experimental.pallas import tpu as pltpu


# -----------------------------------------------------------------------------
# Portable counter-based hash PRNG (plain int32 ops).
# TODO(synk): the exact np.random.choice stream of the PyTorch agent is not
# reproducible; this gives an equivalent deterministic uniform choice.
# -----------------------------------------------------------------------------
_C_STEP = -1640531527   # 0x9E3779B9
_C_ROW = -2048144789    # 0x85EBCA6B
_C_COL = -1028477387    # 0xC2B2AE35
_M1 = 2146121005        # 0x7FEB352D
_M2 = -2076128629       # 0x846CA68B


def _mix32(x):
    """SplitMix-style 32-bit finalizer in plain int32 ops (portable lowering)."""
    def shr(v, n):
        # lax.shift_right_logical wants shape-matched operands; the full-shape
        # constant folds to a vector immediate.
        return lax.shift_right_logical(v, jnp.full(v.shape, n, jnp.int32))
    x = x ^ shr(x, 16)
    x = x * jnp.int32(_M1)
    x = x ^ shr(x, 15)
    x = x * jnp.int32(_M2)
    x = x ^ shr(x, 16)
    return x


# -----------------------------------------------------------------------------
# Shared rollout math (used inside the Pallas kernel AND as the pure-JAX
# reference).  cx, cy: (Bp, Np) f32, Np a multiple of 128 on the lane axis.
# vis0: (Bp, Np) int32 visited mask, 0 = feasible, -1 = visited / padding.
# Returns acc_loss as (Bp, 1) f32.
# -----------------------------------------------------------------------------
def _episode_math(seed, n_steps, cx, cy, vis0, row_offset=0):
    Bp, Np = cx.shape
    idx_pow2 = pl.next_power_of_2(Np)                       # index packing only
    idx_mask = jnp.int32(idx_pow2 - 1)
    high_mask = jnp.int32(0x7FFFFFFF & ~(idx_pow2 - 1))     # sign-bit + index clear

    col = lax.broadcasted_iota(jnp.int32, (Bp, Np), 1)      # node index (lanes)
    row = lax.broadcasted_iota(jnp.int32, (Bp, Np), 0) + row_offset
    # Loop-invariant hash base (hoisted: removes 2 int32 vector muls + 2 adds
    # from every step — JAX does not CSE these across iterations).
    base = seed + row * jnp.int32(_C_ROW) + col * jnp.int32(_C_COL)

    def body(s, carry):
        visited, cur_x, cur_y, acc = carry
        h = base + s * jnp.int32(_C_STEP)                   # scalar mul + vec add

        # Packed key: high bits = random score, low bits = node index; OR with
        # the {0,-1} visited mask makes infeasible nodes strictly smaller than
        # any feasible key.  ONE lane-axis max selects score + index together
        # (tie-break toward the higher index — negligible bias at small N).
        key = ((_mix32(h) & high_mask) | col) | visited
        winner_key = jnp.max(key, axis=1, keepdims=True)    # (Bp, 1)
        winner_idx = winner_key & idx_mask                  # (Bp, 1)

        # One-hot select + lane reduce (no gather, always in-bounds; kept on
        # the XLU — an 8x128 @ 128x1 contraction would waste the MXU).
        sel = col == winner_idx
        onehot = jnp.where(sel, jnp.float32(1.0), jnp.float32(0.0))
        nxt_x = jnp.sum(cx * onehot, axis=1, keepdims=True)
        nxt_y = jnp.sum(cy * onehot, axis=1, keepdims=True)
        dist = jnp.sqrt((nxt_x - cur_x) ** 2 + (nxt_y - cur_y) ** 2)

        visited = visited | jnp.where(sel, jnp.int32(-1), jnp.int32(0))
        return (visited, nxt_x, nxt_y, acc + dist)

    init = (vis0,
            cx[:, 0:1],                                     # start at node 0
            cy[:, 0:1],
            jnp.zeros((Bp, 1), jnp.float32))
    # Fully unroll the short static episode (latency-bound serial chain); cap
    # the factor for long episodes to keep code size bounded.
    unroll = True if n_steps <= 32 else 8
    _, _, _, acc = lax.fori_loop(0, n_steps, body, init, unroll=unroll)
    return acc                                              # (Bp, 1)


# -----------------------------------------------------------------------------
# Fused rollout kernel: the whole N-1 step episode for one batch tile.
# -----------------------------------------------------------------------------
def _rollout_kernel(n_steps, seed_ref, cx_ref, cy_ref, vis_ref, out_ref):
    tile_b = cx_ref.shape[0]
    row_off = pl.program_id(0) * tile_b      # globally unique hash rows per tile
    out_ref[...] = _episode_math(seed_ref[0], n_steps,
                                 cx_ref[...], cy_ref[...], vis_ref[...],
                                 row_offset=row_off)


def _padded_layout(B, N):
    Bp = max(8, ((B + 7) // 8) * 8)              # sublane multiple
    tile_b = min(Bp, 256)                        # batch tile: tiny vs v7x 64MiB VMEM
    Bp = ((Bp + tile_b - 1) // tile_b) * tile_b
    Np = max(128, ((N + 127) // 128) * 128)      # lane multiple, NOT next pow2
    return Bp, Np, tile_b


def _pad_episode_inputs(coords, visited_init, Bp, Np):
    """Padding nodes / batch rows are marked visited (-1) with zero coords, so
    they never win the max and never contribute to the loss."""
    B, N, _ = coords.shape
    cx = jnp.zeros((Bp, Np), jnp.float32).at[:B, :N].set(
        coords[..., 0].astype(jnp.float32))
    cy = jnp.zeros((Bp, Np), jnp.float32).at[:B, :N].set(
        coords[..., 1].astype(jnp.float32))
    vis = jnp.full((Bp, Np), -1, jnp.int32).at[:B, :N].set(
        jnp.where(visited_init.astype(jnp.float32) > 0.5,
                  jnp.int32(-1), jnp.int32(0)))
    return cx, cy, vis


def run_episode_pallas(coords, visited_init, seed):
    B, N, _ = coords.shape
    Bp, Np, tile_b = _padded_layout(B, N)
    cx, cy, vis = _pad_episode_inputs(coords, visited_init, Bp, Np)

    grid_spec = pltpu.PrefetchScalarGridSpec(
        num_scalar_prefetch=1,                   # seed lands in SMEM
        grid=(Bp // tile_b,),
        in_specs=[pl.BlockSpec((tile_b, Np), lambda b, _s: (b, 0)),
                  pl.BlockSpec((tile_b, Np), lambda b, _s: (b, 0)),
                  pl.BlockSpec((tile_b, Np), lambda b, _s: (b, 0))],
        out_specs=pl.BlockSpec((tile_b, 1), lambda b, _s: (b, 0)),
    )
    acc = pl.pallas_call(
        functools.partial(_rollout_kernel, N - 1),     # static episode length
        out_shape=jax.ShapeDtypeStruct((Bp, 1), jnp.float32),
        grid_spec=grid_spec,
        compiler_params=pltpu.CompilerParams(
            dimension_semantics=("parallel",)),        # batch tiles across TCs
    )(jnp.asarray([seed], jnp.int32), cx, cy, vis)
    return acc[:B, 0]


# -----------------------------------------------------------------------------
# Synthetic TSP environment (plain-JAX glue; the original TSPEnv is external).
# State features F=5: [x, y, visited_flag (index F-3), cur_x, cur_y].
# -----------------------------------------------------------------------------
class SyntheticTSPEnv:
    def __init__(self, coords):
        self.coords = jnp.asarray(coords, jnp.float32)        # (B, N, 2)
        self.B, self.N, _ = self.coords.shape
        self.visited = jnp.zeros((self.B, self.N), jnp.float32).at[:, 0].set(1.0)
        self.current = jnp.zeros((self.B,), jnp.int32)        # start at node 0

    def get_state(self):
        cur_xy = self.coords[jnp.arange(self.B), self.current]          # (B, 2)
        cur_feat = jnp.broadcast_to(cur_xy[:, None, :], (self.B, self.N, 2))
        return jnp.concatenate(
            [self.coords, self.visited[:, :, None], cur_feat], axis=-1)  # (B,N,5)


# -----------------------------------------------------------------------------
# RandomAgent.forward equivalent: whole while-not-done rollout in one kernel.
# -----------------------------------------------------------------------------
def random_agent_forward(env, seed: int = 69):
    state = env.get_state()
    if isinstance(state, tuple):
        state = state[0]
    B, N, F = state.shape
    coords = state[..., 0:2]
    visited0 = state[..., F - 3]          # == state[:, :, -3]
    # TODO(synk): the env transition rule (Euclidean move cost, start node 0,
    # done after visiting all nodes => statically N-1 legs, tour not closed)
    # is baked into the kernel because the real TSPEnv.step is external.
    return run_episode_pallas(coords, visited0, seed)


if __name__ == "__main__":
    B, N = 2, 8
    key = jax.random.PRNGKey(0)
    coords = jax.random.uniform(key, (B, N, 2), dtype=jnp.float32)

    env = SyntheticTSPEnv(coords)
    acc_loss = jax.block_until_ready(random_agent_forward(env, seed=69))

    # Pure-JAX reference of the same rollout math (validates the Pallas
    # lowering; RandomAgent/TSPEnv RNG-stream equivalence is not reproducible).
    Bp, Np, _ = _padded_layout(B, N)
    cx, cy, vis = _pad_episode_inputs(coords, env.visited, Bp, Np)
    ref = _episode_math(jnp.int32(69), N - 1, cx, cy, vis)[:B, 0]

    assert acc_loss.shape == (B,)
    assert acc_loss.dtype == jnp.float32
    assert bool(jnp.all(jnp.isfinite(acc_loss)))
    assert bool(jnp.all(acc_loss > 0.0))
    assert bool(jnp.allclose(acc_loss, ref, rtol=1e-5, atol=1e-5))
    print("KERNEL_OK")
</pallas_src>

<mosaic_0001>
module attributes {stable_mosaic.version = 11 : i64} {
  func.func @_rollout_kernel(%arg0: i32, %arg1: memref<1xi32, #tpu.memory_space<smem>>, %arg2: memref<8x128xf32, #tpu.memory_space<vmem>>, %arg3: memref<8x128xf32, #tpu.memory_space<vmem>>, %arg4: memref<8x128xi32, #tpu.memory_space<vmem>>, %arg5: memref<8x1xf32, #tpu.memory_space<vmem>>) attributes {dimension_semantics = [#tpu.dimension_semantics<parallel>], iteration_bounds = array<i64: 1>, scalar_prefetch = 1 : i64, scratch_operands = 0 : i64, tpu.core_type = #tpu.core_type<tc>, window_params = [{transform_indices = @transform_0, window_bounds = array<i64: 8, 128>}, {transform_indices = @transform_1, window_bounds = array<i64: 8, 128>}, {transform_indices = @transform_2, window_bounds = array<i64: 8, 128>}, {transform_indices = @transform_3, window_bounds = array<i64: 8, 1>}]} {
    %c8_i32 = arith.constant 8 : i32
    %0 = arith.muli %arg0, %c8_i32 : i32
    %c0 = arith.constant 0 : index
    %1 = memref.load %arg1[%c0] : memref<1xi32, #tpu.memory_space<smem>>
    %c0_0 = arith.constant 0 : index
    %c0_1 = arith.constant 0 : index
    %2 = vector.load %arg2[%c0_0, %c0_1] : memref<8x128xf32, #tpu.memory_space<vmem>>, vector<8x128xf32>
    %c0_2 = arith.constant 0 : index
    %c0_3 = arith.constant 0 : index
    %3 = vector.load %arg3[%c0_2, %c0_3] : memref<8x128xf32, #tpu.memory_space<vmem>>, vector<8x128xf32>
    %c0_4 = arith.constant 0 : index
    %c0_5 = arith.constant 0 : index
    %4 = vector.load %arg4[%c0_4, %c0_5] : memref<8x128xi32, #tpu.memory_space<vmem>>, vector<8x128xi32>
    %5 = tpu.iota {dimensions = array<i32: 1>} : vector<8x128xi32>
    %6 = tpu.iota {dimensions = array<i32: 0>} : vector<8x128xi32>
    %7 = vector.broadcast %0 : i32 to vector<8x128xi32>
    %8 = arith.addi %6, %7 : vector<8x128xi32>
    %c-2048144789_i32 = arith.constant -2048144789 : i32
    %9 = vector.broadcast %c-2048144789_i32 : i32 to vector<8x128xi32>
    %10 = arith.muli %8, %9 : vector<8x128xi32>
    %11 = vector.broadcast %1 : i32 to vector<8x128xi32>
    %12 = arith.addi %11, %10 : vector<8x128xi32>
    %c-1028477387_i32 = arith.constant -1028477387 : i32
    %13 = vector.broadcast %c-1028477387_i32 : i32 to vector<8x128xi32>
    %14 = arith.muli %5, %13 : vector<8x128xi32>
    %15 = arith.addi %12, %14 : vector<8x128xi32>
    %16 = vector.extract_strided_slice %2 {offsets = [0, 0], sizes = [8, 1], strides = [1, 1]} : vector<8x128xf32> to vector<8x1xf32>
    %17 = vector.extract_strided_slice %3 {offsets = [0, 0], sizes = [8, 1], strides = [1, 1]} : vector<8x128xf32> to vector<8x1xf32>
    %cst = arith.constant 0.000000e+00 : f32
    %18 = vector.broadcast %cst : f32 to vector<8x1xf32>
    %c2147483520_i32 = arith.constant 2147483520 : i32
    %c127_i32 = arith.constant 127 : i32
    %c0_i32 = arith.constant 0 : i32
    %c-1640531527_i32 = arith.constant -1640531527 : i32
    %19 = arith.muli %c0_i32, %c-1640531527_i32 : i32
    %20 = vector.broadcast %19 : i32 to vector<8x128xi32>
    %21 = arith.addi %15, %20 : vector<8x128xi32>
    %c16_i32 = arith.constant 16 : i32
    %22 = vector.broadcast %c16_i32 : i32 to vector<8x128xi32>
    %23 = arith.shrui %21, %22 : vector<8x128xi32>
    %24 = arith.xori %21, %23 : vector<8x128xi32>
    %c2146121005_i32 = arith.constant 2146121005 : i32
    %25 = vector.broadcast %c2146121005_i32 : i32 to vector<8x128xi32>
    %26 = arith.muli %24, %25 : vector<8x128xi32>
    %c15_i32 = arith.constant 15 : i32
    %27 = vector.broadcast %c15_i32 : i32 to vector<8x128xi32>
    %28 = arith.shrui %26, %27 : vector<8x128xi32>
    %29 = arith.xori %26, %28 : vector<8x128xi32>
    %c-2076128629_i32 = arith.constant -2076128629 : i32
    %30 = vector.broadcast %c-2076128629_i32 : i32 to vector<8x128xi32>
    %31 = arith.muli %29, %30 : vector<8x128xi32>
    %c16_i32_6 = arith.constant 16 : i32
    %32 = vector.broadcast %c16_i32_6 : i32 to vector<8x128xi32>
    %33 = arith.shrui %31, %32 : vector<8x128xi32>
    %34 = arith.xori %31, %33 : vector<8x128xi32>
    %35 = vector.broadcast %c2147483520_i32 : i32 to vector<8x128xi32>
    %36 = arith.andi %34, %35 : vector<8x128xi32>
    %37 = arith.ori %36, %5 : vector<8x128xi32>
    %38 = arith.ori %37, %4 : vector<8x128xi32>
    %cst_7 = arith.constant dense<-2147483648> : vector<8xi32>
    %39 = vector.multi_reduction <maxsi>, %38, %cst_7 [1] : vector<8x128xi32> to vector<8xi32>
    %40 = vector.shape_cast %39 : vector<8xi32> to vector<8x1xi32>
    %41 = vector.broadcast %c127_i32 : i32 to vector<8x1xi32>
    %42 = arith.andi %40, %41 : vector<8x1xi32>
    %43 = vector.broadcast %42 : vector<8x1xi32> to vector<8x128xi32>
    %44 = arith.cmpi eq, %5, %43 : vector<8x128xi32>
    %cst_8 = arith.constant 1.000000e+00 : f32
    %cst_9 = arith.constant 0.000000e+00 : f32
    %45 = vector.broadcast %cst_8 : f32 to vector<8x128xf32>
    %46 = vector.broadcast %cst_9 : f32 to vector<8x128xf32>
    %47 = arith.select %44, %45, %46 : vector<8x128xi1>, vector<8x128xf32>
    %48 = arith.mulf %2, %47 : vector<8x128xf32>
    %cst_10 = arith.constant dense<0.000000e+00> : vector<8xf32>
    %49 = vector.multi_reduction <add>, %48, %cst_10 [1] : vector<8x128xf32> to vector<8xf32>
    %50 = vector.shape_cast %49 : vector<8xf32> to vector<8x1xf32>
    %51 = arith.mulf %3, %47 : vector<8x128xf32>
    %cst_11 = arith.constant dense<0.000000e+00> : vector<8xf32>
    %52 = vector.multi_reduction <add>, %51, %cst_11 [1] : vector<8x128xf32> to vector<8xf32>
    %53 = vector.shape_cast %52 : vector<8xf32> to vector<8x1xf32>
    %54 = arith.subf %50, %16 : vector<8x1xf32>
    %55 = arith.mulf %54, %54 : vector<8x1xf32>
    %56 = arith.subf %53, %17 : vector<8x1xf32>
    %57 = arith.mulf %56, %56 : vector<8x1xf32>
    %58 = arith.addf %55, %57 : vector<8x1xf32>
    %59 = math.sqrt %58 : vector<8x1xf32>
    %c-1_i32 = arith.constant -1 : i32
    %c0_i32_12 = arith.constant 0 : i32
    %60 = vector.broadcast %c-1_i32 : i32 to vector<8x128xi32>
    %61 = vector.broadcast %c0_i32_12 : i32 to vector<8x128xi32>
    %62 = arith.select %44, %60, %61 : vector<8x128xi1>, vector<8x128xi32>
    %63 = arith.ori %4, %62 : vector<8x128xi32>
    %64 = arith.addf %18, %59 : vector<8x1xf32>
    %c1_i32 = arith.constant 1 : i32
    %c-1640531527_i32_13 = arith.constant -1640531527 : i32
    %65 = arith.muli %c1_i32, %c-1640531527_i32_13 : i32
    %66 = vector.broadcast %65 : i32 to vector<8x128xi32>
    %67 = arith.addi %15, %66 : vector<8x128xi32>
    %c16_i32_14 = arith.constant 16 : i32
    %68 = vector.broadcast %c16_i32_14 : i32 to vector<8x128xi32>
    %69 = arith.shrui %67, %68 : vector<8x128xi32>
    %70 = arith.xori %67, %69 : vector<8x128xi32>
    %c2146121005_i32_15 = arith.constant 2146121005 : i32
    %71 = vector.broadcast %c2146121005_i32_15 : i32 to vector<8x128xi32>
    %72 = arith.muli %70, %71 : vector<8x128xi32>
    %c15_i32_16 = arith.constant 15 : i32
    %73 = vector.broadcast %c15_i32_16 : i32 to vector<8x128xi32>
    %74 = arith.shrui %72, %73 : vector<8x128xi32>
    %75 = arith.xori %72, %74 : vector<8x128xi32>
    %c-2076128629_i32_17 = arith.constant -2076128629 : i32
    %76 = vector.broadcast %c-2076128629_i32_17 : i32 to vector<8x128xi32>
    %77 = arith.muli %75, %76 : vector<8x128xi32>
    %c16_i32_18 = arith.constant 16 : i32
    %78 = vector.broadcast %c16_i32_18 : i32 to vector<8x128xi32>
    %79 = arith.shrui %77, %78 : vector<8x128xi32>
    %80 = arith.xori %77, %79 : vector<8x128xi32>
    %81 = vector.broadcast %c2147483520_i32 : i32 to vector<8x128xi32>
    %82 = arith.andi %80, %81 : vector<8x128xi32>
    %83 = arith.ori %82, %5 : vector<8x128xi32>
    %84 = arith.ori %83, %63 : vector<8x128xi32>
    %cst_19 = arith.constant dense<-2147483648> : vector<8xi32>
    %85 = vector.multi_reduction <maxsi>, %84, %cst_19 [1] : vector<8x128xi32> to vector<8xi32>
    %86 = vector.shape_cast %85 : vector<8xi32> to vector<8x1xi32>
    %87 = vector.broadcast %c127_i32 : i32 to vector<8x1xi32>
    %88 = arith.andi %86, %87 : vector<8x1xi32>
    %89 = vector.broadcast %88 : vector<8x1xi32> to vector<8x128xi32>
    %90 = arith.cmpi eq, %5, %89 : vector<8x128xi32>
    %cst_20 = arith.constant 1.000000e+00 : f32
    %cst_21 = arith.constant 0.000000e+00 : f32
    %91 = vector.broadcast %cst_20 : f32 to vector<8x128xf32>
    %92 = vector.broadcast %cst_21 : f32 to vector<8x128xf32>
    %93 = arith.select %90, %91, %92 : vector<8x128xi1>, vector<8x128xf32>
    %94 = arith.mulf %2, %93 : vector<8x128xf32>
    %cst_22 = arith.constant dense<0.000000e+00> : vector<8xf32>
    %95 = vector.multi_reduction <add>, %94, %cst_22 [1] : vector<8x128xf32> to vector<8xf32>
    %96 = vector.shape_cast %95 : vector<8xf32> to vector<8x1xf32>
    %97 = arith.mulf %3, %93 : vector<8x128xf32>
    %cst_23 = arith.constant dense<0.000000e+00> : vector<8xf32>
    %98 = vector.multi_reduction <add>, %97, %cst_23 [1] : vector<8x128xf32> to vector<8xf32>
    %99 = vector.shape_cast %98 : vector<8xf32> to vector<8x1xf32>
    %100 = arith.subf %96, %50 : vector<8x1xf32>
    %101 = arith.mulf %100, %100 : vector<8x1xf32>
    %102 = arith.subf %99, %53 : vector<8x1xf32>
    %103 = arith.mulf %102, %102 : vector<8x1xf32>
    %104 = arith.addf %101, %103 : vector<8x1xf32>
    %105 = math.sqrt %104 : vector<8x1xf32>
    %c-1_i32_24 = arith.constant -1 : i32
    %c0_i32_25 = arith.constant 0 : i32
    %106 = vector.broadcast %c-1_i32_24 : i32 to vector<8x128xi32>
    %107 = vector.broadcast %c0_i32_25 : i32 to vector<8x128xi32>
    %108 = arith.select %90, %106, %107 : vector<8x128xi1>, vector<8x128xi32>
    %109 = arith.ori %63, %108 : vector<8x128xi32>
    %110 = arith.addf %64, %105 : vector<8x1xf32>
    %c2_i32 = arith.constant 2 : i32
    %c-1640531527_i32_26 = arith.constant -1640531527 : i32
    %111 = arith.muli %c2_i32, %c-1640531527_i32_26 : i32
    %112 = vector.broadcast %111 : i32 to vector<8x128xi32>
    %113 = arith.addi %15, %112 : vector<8x128xi32>
    %c16_i32_27 = arith.constant 16 : i32
    %114 = vector.broadcast %c16_i32_27 : i32 to vector<8x128xi32>
    %115 = arith.shrui %113, %114 : vector<8x128xi32>
    %116 = arith.xori %113, %115 : vector<8x128xi32>
    %c2146121005_i32_28 = arith.constant 2146121005 : i32
    %117 = vector.broadcast %c2146121005_i32_28 : i32 to vector<8x128xi32>
    %118 = arith.muli %116, %117 : vector<8x128xi32>
    %c15_i32_29 = arith.constant 15 : i32
    %119 = vector.broadcast %c15_i32_29 : i32 to vector<8x128xi32>
    %120 = arith.shrui %118, %119 : vector<8x128xi32>
    %121 = arith.xori %118, %120 : vector<8x128xi32>
    %c-2076128629_i32_30 = arith.constant -2076128629 : i32
    %122 = vector.broadcast %c-2076128629_i32_30 : i32 to vector<8x128xi32>
    %123 = arith.muli %121, %122 : vector<8x128xi32>
    %c16_i32_31 = arith.constant 16 : i32
    %124 = vector.broadcast %c16_i32_31 : i32 to vector<8x128xi32>
    %125 = arith.shrui %123, %124 : vector<8x128xi32>
    %126 = arith.xori %123, %125 : vector<8x128xi32>
    %127 = vector.broadcast %c2147483520_i32 : i32 to vector<8x128xi32>
    %128 = arith.andi %126, %127 : vector<8x128xi32>
    %129 = arith.ori %128, %5 : vector<8x128xi32>
    %130 = arith.ori %129, %109 : vector<8x128xi32>
    %cst_32 = arith.constant dense<-2147483648> : vector<8xi32>
    %131 = vector.multi_reduction <maxsi>, %130, %cst_32 [1] : vector<8x128xi32> to vector<8xi32>
    %132 = vector.shape_cast %131 : vector<8xi32> to vector<8x1xi32>
    %133 = vector.broadcast %c127_i32 : i32 to vector<8x1xi32>
    %134 = arith.andi %132, %133 : vector<8x1xi32>
    %135 = vector.broadcast %134 : vector<8x1xi32> to vector<8x128xi32>
    %136 = arith.cmpi eq, %5, %135 : vector<8x128xi32>
    %cst_33 = arith.constant 1.000000e+00 : f32
    %cst_34 = arith.constant 0.000000e+00 : f32
    %137 = vector.broadcast %cst_33 : f32 to vector<8x128xf32>
    %138 = vector.broadcast %cst_34 : f32 to vector<8x128xf32>
    %139 = arith.select %136, %137, %138 : vector<8x128xi1>, vector<8x128xf32>
    %140 = arith.mulf %2, %139 : vector<8x128xf32>
    %cst_35 = arith.constant dense<0.000000e+00> : vector<8xf32>
    %141 = vector.multi_reduction <add>, %140, %cst_35 [1] : vector<8x128xf32> to vector<8xf32>
    %142 = vector.shape_cast %141 : vector<8xf32> to vector<8x1xf32>
    %143 = arith.mulf %3, %139 : vector<8x128xf32>
    %cst_36 = arith.constant dense<0.000000e+00> : vector<8xf32>
    %144 = vector.multi_reduction <add>, %143, %cst_36 [1] : vector<8x128xf32> to vector<8xf32>
    %145 = vector.shape_cast %144 : vector<8xf32> to vector<8x1xf32>
    %146 = arith.subf %142, %96 : vector<8x1xf32>
    %147 = arith.mulf %146, %146 : vector<8x1xf32>
    %148 = arith.subf %145, %99 : vector<8x1xf32>
    %149 = arith.mulf %148, %148 : vector<8x1xf32>
    %150 = arith.addf %147, %149 : vector<8x1xf32>
    %151 = math.sqrt %150 : vector<8x1xf32>
    %c-1_i32_37 = arith.constant -1 : i32
    %c0_i32_38 = arith.constant 0 : i32
    %152 = vector.broadcast %c-1_i32_37 : i32 to vector<8x128xi32>
    %153 = vector.broadcast %c0_i32_38 : i32 to vector<8x128xi32>
    %154 = arith.select %136, %152, %153 : vector<8x128xi1>, vector<8x128xi32>
    %155 = arith.ori %109, %154 : vector<8x128xi32>
    %156 = arith.addf %110, %151 : vector<8x1xf32>
    %c3_i32 = arith.constant 3 : i32
    %c-1640531527_i32_39 = arith.constant -1640531527 : i32
    %157 = arith.muli %c3_i32, %c-1640531527_i32_39 : i32
    %158 = vector.broadcast %157 : i32 to vector<8x128xi32>
    %159 = arith.addi %15, %158 : vector<8x128xi32>
    %c16_i32_40 = arith.constant 16 : i32
    %160 = vector.broadcast %c16_i32_40 : i32 to vector<8x128xi32>
    %161 = arith.shrui %159, %160 : vector<8x128xi32>
    %162 = arith.xori %159, %161 : vector<8x128xi32>
    %c2146121005_i32_41 = arith.constant 2146121005 : i32
    %163 = vector.broadcast %c2146121005_i32_41 : i32 to vector<8x128xi32>
    %164 = arith.muli %162, %163 : vector<8x128xi32>
    %c15_i32_42 = arith.constant 15 : i32
    %165 = vector.broadcast %c15_i32_42 : i32 to vector<8x128xi32>
    %166 = arith.shrui %164, %165 : vector<8x128xi32>
    %167 = arith.xori %164, %166 : vector<8x128xi32>
    %c-2076128629_i32_43 = arith.constant -2076128629 : i32
    %168 = vector.broadcast %c-2076128629_i32_43 : i32 to vector<8x128xi32>
    %169 = arith.muli %167, %168 : vector<8x128xi32>
    %c16_i32_44 = arith.constant 16 : i32
    %170 = vector.broadcast %c16_i32_44 : i32 to vector<8x128xi32>
    %171 = arith.shrui %169, %170 : vector<8x128xi32>
    %172 = arith.xori %169, %171 : vector<8x128xi32>
    %173 = vector.broadcast %c2147483520_i32 : i32 to vector<8x128xi32>
    %174 = arith.andi %172, %173 : vector<8x128xi32>
    %175 = arith.ori %174, %5 : vector<8x128xi32>
    %176 = arith.ori %175, %155 : vector<8x128xi32>
    %cst_45 = arith.constant dense<-2147483648> : vector<8xi32>
    %177 = vector.multi_reduction <maxsi>, %176, %cst_45 [1] : vector<8x128xi32> to vector<8xi32>
    %178 = vector.shape_cast %177 : vector<8xi32> to vector<8x1xi32>
    %179 = vector.broadcast %c127_i32 : i32 to vector<8x1xi32>
    %180 = arith.andi %178, %179 : vector<8x1xi32>
    %181 = vector.broadcast %180 : vector<8x1xi32> to vector<8x128xi32>
    %182 = arith.cmpi eq, %5, %181 : vector<8x128xi32>
    %cst_46 = arith.constant 1.000000e+00 : f32
    %cst_47 = arith.constant 0.000000e+00 : f32
    %183 = vector.broadcast %cst_46 : f32 to vector<8x128xf32>
    %184 = vector.broadcast %cst_47 : f32 to vector<8x128xf32>
    %185 = arith.select %182, %183, %184 : vector<8x128xi1>, vector<8x128xf32>
    %186 = arith.mulf %2, %185 : vector<8x128xf32>
    %cst_48 = arith.constant dense<0.000000e+00> : vector<8xf32>
    %187 = vector.multi_reduction <add>, %186, %cst_48 [1] : vector<8x128xf32> to vector<8xf32>
    %188 = vector.shape_cast %187 : vector<8xf32> to vector<8x1xf32>
    %189 = arith.mulf %3, %185 : vector<8x128xf32>
    %cst_49 = arith.constant dense<0.000000e+00> : vector<8xf32>
    %190 = vector.multi_reduction <add>, %189, %cst_49 [1] : vector<8x128xf32> to vector<8xf32>
    %191 = vector.shape_cast %190 : vector<8xf32> to vector<8x1xf32>
    %192 = arith.subf %188, %142 : vector<8x1xf32>
    %193 = arith.mulf %192, %192 : vector<8x1xf32>
    %194 = arith.subf %191, %145 : vector<8x1xf32>
    %195 = arith.mulf %194, %194 : vector<8x1xf32>
    %196 = arith.addf %193, %195 : vector<8x1xf32>
    %197 = math.sqrt %196 : vector<8x1xf32>
    %c-1_i32_50 = arith.constant -1 : i32
    %c0_i32_51 = arith.constant 0 : i32
    %198 = vector.broadcast %c-1_i32_50 : i32 to vector<8x128xi32>
    %199 = vector.broadcast %c0_i32_51 : i32 to vector<8x128xi32>
    %200 = arith.select %182, %198, %199 : vector<8x128xi1>, vector<8x128xi32>
    %201 = arith.ori %155, %200 : vector<8x128xi32>
    %202 = arith.addf %156, %197 : vector<8x1xf32>
    %c4_i32 = arith.constant 4 : i32
    %c-1640531527_i32_52 = arith.constant -1640531527 : i32
    %203 = arith.muli %c4_i32, %c-1640531527_i32_52 : i32
    %204 = vector.broadcast %203 : i32 to vector<8x128xi32>
    %205 = arith.addi %15, %204 : vector<8x128xi32>
    %c16_i32_53 = arith.constant 16 : i32
    %206 = vector.broadcast %c16_i32_53 : i32 to vector<8x128xi32>
    %207 = arith.shrui %205, %206 : vector<8x128xi32>
    %208 = arith.xori %205, %207 : vector<8x128xi32>
    %c2146121005_i32_54 = arith.constant 2146121005 : i32
    %209 = vector.broadcast %c2146121005_i32_54 : i32 to vector<8x128xi32>
    %210 = arith.muli %208, %209 : vector<8x128xi32>
    %c15_i32_55 = arith.constant 15 : i32
    %211 = vector.broadcast %c15_i32_55 : i32 to vector<8x128xi32>
    %212 = arith.shrui %210, %211 : vector<8x128xi32>
    %213 = arith.xori %210, %212 : vector<8x128xi32>
    %c-2076128629_i32_56 = arith.constant -2076128629 : i32
    %214 = vector.broadcast %c-2076128629_i32_56 : i32 to vector<8x128xi32>
    %215 = arith.muli %213, %214 : vector<8x128xi32>
    %c16_i32_57 = arith.constant 16 : i32
    %216 = vector.broadcast %c16_i32_57 : i32 to vector<8x128xi32>
    %217 = arith.shrui %215, %216 : vector<8x128xi32>
    %218 = arith.xori %215, %217 : vector<8x128xi32>
    %219 = vector.broadcast %c2147483520_i32 : i32 to vector<8x128xi32>
    %220 = arith.andi %218, %219 : vector<8x128xi32>
    %221 = arith.ori %220, %5 : vector<8x128xi32>
    %222 = arith.ori %221, %201 : vector<8x128xi32>
    %cst_58 = arith.constant dense<-2147483648> : vector<8xi32>
    %223 = vector.multi_reduction <maxsi>, %222, %cst_58 [1] : vector<8x128xi32> to vector<8xi32>
    %224 = vector.shape_cast %223 : vector<8xi32> to vector<8x1xi32>
    %225 = vector.broadcast %c127_i32 : i32 to vector<8x1xi32>
    %226 = arith.andi %224, %225 : vector<8x1xi32>
    %227 = vector.broadcast %226 : vector<8x1xi32> to vector<8x128xi32>
    %228 = arith.cmpi eq, %5, %227 : vector<8x128xi32>
    %cst_59 = arith.constant 1.000000e+00 : f32
    %cst_60 = arith.constant 0.000000e+00 : f32
    %229 = vector.broadcast %cst_59 : f32 to vector<8x128xf32>
    %230 = vector.broadcast %cst_60 : f32 to vector<8x128xf32>
    %231 = arith.select %228, %229, %230 : vector<8x128xi1>, vector<8x128xf32>
    %232 = arith.mulf %2, %231 : vector<8x128xf32>
    %cst_61 = arith.constant dense<0.000000e+00> : vector<8xf32>
    %233 = vector.multi_reduction <add>, %232, %cst_61 [1] : vector<8x128xf32> to vector<8xf32>
    %234 = vector.shape_cast %233 : vector<8xf32> to vector<8x1xf32>
    %235 = arith.mulf %3, %231 : vector<8x128xf32>
    %cst_62 = arith.constant dense<0.000000e+00> : vector<8xf32>
    %236 = vector.multi_reduction <add>, %235, %cst_62 [1] : vector<8x128xf32> to vector<8xf32>
    %237 = vector.shape_cast %236 : vector<8xf32> to vector<8x1xf32>
    %238 = arith.subf %234, %188 : vector<8x1xf32>
    %239 = arith.mulf %238, %238 : vector<8x1xf32>
    %240 = arith.subf %237, %191 : vector<8x1xf32>
    %241 = arith.mulf %240, %240 : vector<8x1xf32>
    %242 = arith.addf %239, %241 : vector<8x1xf32>
    %243 = math.sqrt %242 : vector<8x1xf32>
    %c-1_i32_63 = arith.constant -1 : i32
    %c0_i32_64 = arith.constant 0 : i32
    %244 = vector.broadcast %c-1_i32_63 : i32 to vector<8x128xi32>
    %245 = vector.broadcast %c0_i32_64 : i32 to vector<8x128xi32>
    %246 = arith.select %228, %244, %245 : vector<8x128xi1>, vector<8x128xi32>
    %247 = arith.ori %201, %246 : vector<8x128xi32>
    %248 = arith.addf %202, %243 : vector<8x1xf32>
    %c5_i32 = arith.constant 5 : i32
    %c-1640531527_i32_65 = arith.constant -1640531527 : i32
    %249 = arith.muli %c5_i32, %c-1640531527_i32_65 : i32
    %250 = vector.broadcast %249 : i32 to vector<8x128xi32>
    %251 = arith.addi %15, %250 : vector<8x128xi32>
    %c16_i32_66 = arith.constant 16 : i32
    %252 = vector.broadcast %c16_i32_66 : i32 to vector<8x128xi32>
    %253 = arith.shrui %251, %252 : vector<8x128xi32>
    %254 = arith.xori %251, %253 : vector<8x128xi32>
    %c2146121005_i32_67 = arith.constant 2146121005 : i32
    %255 = vector.broadcast %c2146121005_i32_67 : i32 to vector<8x128xi32>
    %256 = arith.muli %254, %255 : vector<8x128xi32>
    %c15_i32_68 = arith.constant 15 : i32
    %257 = vector.broadcast %c15_i32_68 : i32 to vector<8x128xi32>
    %258 = arith.shrui %256, %257 : vector<8x128xi32>
    %259 = arith.xori %256, %258 : vector<8x128xi32>
    %c-2076128629_i32_69 = arith.constant -2076128629 : i32
    %260 = vector.broadcast %c-2076128629_i32_69 : i32 to vector<8x128xi32>
    %261 = arith.muli %259, %260 : vector<8x128xi32>
    %c16_i32_70 = arith.constant 16 : i32
    %262 = vector.broadcast %c16_i32_70 : i32 to vector<8x128xi32>
    %263 = arith.shrui %261, %262 : vector<8x128xi32>
    %264 = arith.xori %261, %263 : vector<8x128xi32>
    %265 = vector.broadcast %c2147483520_i32 : i32 to vector<8x128xi32>
    %266 = arith.andi %264, %265 : vector<8x128xi32>
    %267 = arith.ori %266, %5 : vector<8x128xi32>
    %268 = arith.ori %267, %247 : vector<8x128xi32>
    %cst_71 = arith.constant dense<-2147483648> : vector<8xi32>
    %269 = vector.multi_reduction <maxsi>, %268, %cst_71 [1] : vector<8x128xi32> to vector<8xi32>
    %270 = vector.shape_cast %269 : vector<8xi32> to vector<8x1xi32>
    %271 = vector.broadcast %c127_i32 : i32 to vector<8x1xi32>
    %272 = arith.andi %270, %271 : vector<8x1xi32>
    %273 = vector.broadcast %272 : vector<8x1xi32> to vector<8x128xi32>
    %274 = arith.cmpi eq, %5, %273 : vector<8x128xi32>
    %cst_72 = arith.constant 1.000000e+00 : f32
    %cst_73 = arith.constant 0.000000e+00 : f32
    %275 = vector.broadcast %cst_72 : f32 to vector<8x128xf32>
    %276 = vector.broadcast %cst_73 : f32 to vector<8x128xf32>
    %277 = arith.select %274, %275, %276 : vector<8x128xi1>, vector<8x128xf32>
    %278 = arith.mulf %2, %277 : vector<8x128xf32>
    %cst_74 = arith.constant dense<0.000000e+00> : vector<8xf32>
    %279 = vector.multi_reduction <add>, %278, %cst_74 [1] : vector<8x128xf32> to vector<8xf32>
    %280 = vector.shape_cast %279 : vector<8xf32> to vector<8x1xf32>
    %281 = arith.mulf %3, %277 : vector<8x128xf32>
    %cst_75 = arith.constant dense<0.000000e+00> : vector<8xf32>
    %282 = vector.multi_reduction <add>, %281, %cst_75 [1] : vector<8x128xf32> to vector<8xf32>
    %283 = vector.shape_cast %282 : vector<8xf32> to vector<8x1xf32>
    %284 = arith.subf %280, %234 : vector<8x1xf32>
    %285 = arith.mulf %284, %284 : vector<8x1xf32>
    %286 = arith.subf %283, %237 : vector<8x1xf32>
    %287 = arith.mulf %286, %286 : vector<8x1xf32>
    %288 = arith.addf %285, %287 : vector<8x1xf32>
    %289 = math.sqrt %288 : vector<8x1xf32>
    %c-1_i32_76 = arith.constant -1 : i32
    %c0_i32_77 = arith.constant 0 : i32
    %290 = vector.broadcast %c-1_i32_76 : i32 to vector<8x128xi32>
    %291 = vector.broadcast %c0_i32_77 : i32 to vector<8x128xi32>
    %292 = arith.select %274, %290, %291 : vector<8x128xi1>, vector<8x128xi32>
    %293 = arith.ori %247, %292 : vector<8x128xi32>
    %294 = arith.addf %248, %289 : vector<8x1xf32>
    %c6_i32 = arith.constant 6 : i32
    %c-1640531527_i32_78 = arith.constant -1640531527 : i32
    %295 = arith.muli %c6_i32, %c-1640531527_i32_78 : i32
    %296 = vector.broadcast %295 : i32 to vector<8x128xi32>
    %297 = arith.addi %15, %296 : vector<8x128xi32>
    %c16_i32_79 = arith.constant 16 : i32
    %298 = vector.broadcast %c16_i32_79 : i32 to vector<8x128xi32>
    %299 = arith.shrui %297, %298 : vector<8x128xi32>
    %300 = arith.xori %297, %299 : vector<8x128xi32>
    %c2146121005_i32_80 = arith.constant 2146121005 : i32
    %301 = vector.broadcast %c2146121005_i32_80 : i32 to vector<8x128xi32>
    %302 = arith.muli %300, %301 : vector<8x128xi32>
    %c15_i32_81 = arith.constant 15 : i32
    %303 = vector.broadcast %c15_i32_81 : i32 to vector<8x128xi32>
    %304 = arith.shrui %302, %303 : vector<8x128xi32>
    %305 = arith.xori %302, %304 : vector<8x128xi32>
    %c-2076128629_i32_82 = arith.constant -2076128629 : i32
    %306 = vector.broadcast %c-2076128629_i32_82 : i32 to vector<8x128xi32>
    %307 = arith.muli %305, %306 : vector<8x128xi32>
    %c16_i32_83 = arith.constant 16 : i32
    %308 = vector.broadcast %c16_i32_83 : i32 to vector<8x128xi32>
    %309 = arith.shrui %307, %308 : vector<8x128xi32>
    %310 = arith.xori %307, %309 : vector<8x128xi32>
    %311 = vector.broadcast %c2147483520_i32 : i32 to vector<8x128xi32>
    %312 = arith.andi %310, %311 : vector<8x128xi32>
    %313 = arith.ori %312, %5 : vector<8x128xi32>
    %314 = arith.ori %313, %293 : vector<8x128xi32>
    %cst_84 = arith.constant dense<-2147483648> : vector<8xi32>
    %315 = vector.multi_reduction <maxsi>, %314, %cst_84 [1] : vector<8x128xi32> to vector<8xi32>
    %316 = vector.shape_cast %315 : vector<8xi32> to vector<8x1xi32>
    %317 = vector.broadcast %c127_i32 : i32 to vector<8x1xi32>
    %318 = arith.andi %316, %317 : vector<8x1xi32>
    %319 = vector.broadcast %318 : vector<8x1xi32> to vector<8x128xi32>
    %320 = arith.cmpi eq, %5, %319 : vector<8x128xi32>
    %cst_85 = arith.constant 1.000000e+00 : f32
    %cst_86 = arith.constant 0.000000e+00 : f32
    %321 = vector.broadcast %cst_85 : f32 to vector<8x128xf32>
    %322 = vector.broadcast %cst_86 : f32 to vector<8x128xf32>
    %323 = arith.select %320, %321, %322 : vector<8x128xi1>, vector<8x128xf32>
    %324 = arith.mulf %2, %323 : vector<8x128xf32>
    %cst_87 = arith.constant dense<0.000000e+00> : vector<8xf32>
    %325 = vector.multi_reduction <add>, %324, %cst_87 [1] : vector<8x128xf32> to vector<8xf32>
    %326 = vector.shape_cast %325 : vector<8xf32> to vector<8x1xf32>
    %327 = arith.mulf %3, %323 : vector<8x128xf32>
    %cst_88 = arith.constant dense<0.000000e+00> : vector<8xf32>
    %328 = vector.multi_reduction <add>, %327, %cst_88 [1] : vector<8x128xf32> to vector<8xf32>
    %329 = vector.shape_cast %328 : vector<8xf32> to vector<8x1xf32>
    %330 = arith.subf %326, %280 : vector<8x1xf32>
    %331 = arith.mulf %330, %330 : vector<8x1xf32>
    %332 = arith.subf %329, %283 : vector<8x1xf32>
    %333 = arith.mulf %332, %332 : vector<8x1xf32>
    %334 = arith.addf %331, %333 : vector<8x1xf32>
    %335 = math.sqrt %334 : vector<8x1xf32>
    %c-1_i32_89 = arith.constant -1 : i32
    %c0_i32_90 = arith.constant 0 : i32
    %336 = vector.broadcast %c-1_i32_89 : i32 to vector<8x128xi32>
    %337 = vector.broadcast %c0_i32_90 : i32 to vector<8x128xi32>
    %338 = arith.select %320, %336, %337 : vector<8x128xi1>, vector<8x128xi32>
    %339 = arith.ori %293, %338 : vector<8x128xi32>
    %340 = arith.addf %294, %335 : vector<8x1xf32>
    %c7_i32 = arith.constant 7 : i32
    %c0_91 = arith.constant 0 : index
    %c0_92 = arith.constant 0 : index
    %341 = vector.load %arg5[%c0_91, %c0_92] : memref<8x1xf32, #tpu.memory_space<vmem>>, vector<8x1xf32>
    tpu.vector_store %arg5[%c0_91, %c0_92], %340 {strides = array<i32>} : memref<8x1xf32, #tpu.memory_space<vmem>>, vector<8x1xf32>,
    return
  }
  func.func @transform_0(%arg0: i32, %arg1: memref<1xi32, #tpu.memory_space<smem>>) -> (i32, i32) {
    %c0_i32 = arith.constant 0 : i32
    %c0_i32_0 = arith.constant 0 : i32
    return %arg0, %c0_i32 : i32, i32
  }
  func.func @transform_1(%arg0: i32, %arg1: memref<1xi32, #tpu.memory_space<smem>>) -> (i32, i32) {
    %c0_i32 = arith.constant 0 : i32
    %c0_i32_0 = arith.constant 0 : i32
    return %arg0, %c0_i32 : i32, i32
  }
  func.func @transform_2(%arg0: i32, %arg1: memref<1xi32, #tpu.memory_space<smem>>) -> (i32, i32) {
    %c0_i32 = arith.constant 0 : i32
    %c0_i32_0 = arith.constant 0 : i32
    return %arg0, %c0_i32 : i32, i32
  }
  func.func @transform_3(%arg0: i32, %arg1: memref<1xi32, #tpu.memory_space<smem>>) -> (i32, i32) {
    %c0_i32 = arith.constant 0 : i32
    %c0_i32_0 = arith.constant 0 : i32
    return %arg0, %c0_i32 : i32, i32
  }
}

</mosaic_0001>

<bundles_post_ra>
// kernel: tpu_custom_call.1
= control target key start
LH: loop header
LB: loop body
LE: loop exit
PB: predicated region body
PF: predicated region fallthrough
CT: control target
= control target key end

     0   :  { %10 = vsyncpa [#allocation5], 0  ;;  %s641_s0 = inlined_call_operand.<no memory space> [shape: s32[1], index: 0, kind: input, shape index: {}]   ;;  %s642_s1 = inlined_call_operand.hbm [shape: f32[8,128], index: 1, kind: input, shape index: {}]   ;;  %s643_s2 = inlined_call_operand.hbm [shape: f32[8,128], index: 2, kind: input, shape index: {}]   ;;  %s644_s3 = inlined_call_operand.hbm [shape: s32[8,128], index: 3, kind: input, shape index: {}]   ;;  %s645_s4 = inlined_call_operand.vmem [shape: f32[8,1], index: 4, kind: output, shape index: {}]  }
   0x1   :  { %11 = vsyncpa [#allocation7], 0  ;;  %s505_s15 = smov [#allocation6]   ;;  %s506_s17 = smov [#allocation4]  }
   0x2   :  { %s28_s16 = sshll.u32 %s505_s15, 4  ;;  %s18_s18 = sshll.u32 %s506_s17, 4  ;;  %s29_s16 = int_to_ptr.vmem [resolvable:$true] %s28_s16  ;;  %s19_s18 = int_to_ptr.vmem [resolvable:$true] %s18_s18 }
   0x3   :  { %s449_s19 = scalar_lea.vmem %s29_s16, 128  ;;  %p454_p1 = scmp.lt.s32.totalorder %s29_s16, %s29_s16 }
   0x4   :  { %p450_p0 = scmp.ne.s32.totalorder %s29_s16, %s449_s19  ;;  %p455_p2 = scmp.lt.s32.totalorder %s449_s19, %s449_s19 }
   0x6   :  { %p456_p3 = por %p455_p2, %p454_p1 }
   0x8   :  { %p457_p4 = pnand %p456_p3, %p450_p0 }
   0xa   :  { %460 = shalt.err (!%p457_p4)
}
   0xb   :  { %31 = dma.hbm_to_vmem [thread:$0]  %s643_s2, 128, %s29_s16, [#allocation7]  }
   0xc   :  { %s469_s22 = scalar_lea.vmem %s19_s18, 128  ;;  %p474_p6 = scmp.lt.s32.totalorder %s19_s18, %s19_s18 }
   0xd   :  { %p470_p5 = scmp.ne.s32.totalorder %s19_s18, %s469_s22  ;;  %p475_p7 = scmp.lt.s32.totalorder %s469_s22, %s469_s22 }
   0xf   :  { %p476_p8 = por %p475_p7, %p474_p6 }
  0x11   :  { %p477_p9 = pnand %p476_p8, %p470_p5 }
  0x13   :  { %480 = shalt.err (!%p477_p9)
}
  0x14   :  { %21 = dma.hbm_to_vmem [thread:$0]  %s642_s1, 128, %s19_s18, [#allocation5]  }
  0x15   :  { %s507_s25 = smov [#allocation8]  }
  0x16   :  { %s38_s26 = sshll.u32 %s507_s25, 4  ;;  %s39_s26 = int_to_ptr.vmem [resolvable:$true] %s38_s26 }
  0x17   :  { %s489_s27 = scalar_lea.vmem %s39_s26, 128  ;;  %p494_p11 = scmp.lt.s32.totalorder %s39_s26, %s39_s26 }
  0x18   :  { %p490_p10 = scmp.ne.s32.totalorder %s39_s26, %s489_s27  ;;  %p495_p12 = scmp.lt.s32.totalorder %s489_s27, %s489_s27 }
  0x1a   :  { %p496_p13 = por %p495_p12, %p494_p11 }
  0x1c   :  { %p497_p0 = pnand %p496_p13, %p490_p10 }
  0x1e   :  { %500 = shalt.err (!%p497_p0)
}
  0x1f   :  { %41 = dma.hbm_to_vmem [thread:$0]  %s644_s3, 128, %s39_s26, [#allocation7]  }
  0x20   :  { %501 = dma.done.wait [#allocation5], 128  }
  0x21   :  { %502 = vsyncadd [#allocation5], 4294967168 }
  0x22   :  { %503 = dma.done.wait [#allocation7], 256  }
  0x23   :  { %504 = vsyncadd [#allocation7], 4294967040  ;;  %v56_v0 = vlaneseq  ;;  %v63_v3 = vstv %s641_s0  ;;  %v55_v17 = vld [vmem:[#allocation8] sm:$0xff]  ;;  %v508_v44 = vmov 0  }
  0x25   :  { %v544_v1 = vand.u32 127, %v56_v0  ;;  %v59_v2 = vshrl.u32 %v56_v0, 7 }
  0x27   :  { %v62_v4 = vmul.u32 2246822507, %v59_v2  ;;  %v65_v5 = vmul.u32 3266489909, %v544_v1 }
  0x29   :  { %v64_v6 = vadd.s32 %v63_v3, %v62_v4 }
  0x2b   :  { %v550_v7 = vadd.s32 %v65_v5, %v64_v6 }
  0x2d   :  { %v67_v8 = vshrl.u32 %v550_v7, 16  ;;  %v116_v26 = vadd.s32 2654435769, %v550_v7  ;;  %v166_v54 = vadd.s32 1013904242, %v550_v7 }
  0x2f   :  { %v68_v9 = vxor.u32 %v67_v8, %v550_v7  ;;  %v117_v27 = vshrl.u32 %v116_v26, 16  ;;  %v167_v55 = vshrl.u32 %v166_v54, 16 }
  0x31   :  { %v69_v10 = vmul.u32 2146121005, %v68_v9  ;;  %v118_v28 = vxor.u32 %v117_v27, %v116_v26  ;;  %v168_v56 = vxor.u32 %v167_v55, %v166_v54 }
  0x33   :  { %v70_v11 = vshrl.u32 %v69_v10, 15  ;;  %v119_v29 = vmul.u32 2146121005, %v118_v28  ;;  %v169_v57 = vmul.u32 2146121005, %v168_v56 }
  0x35   :  { %v71_v12 = vxor.u32 %v70_v11, %v69_v10  ;;  %v120_v30 = vshrl.u32 %v119_v29, 15  ;;  %v170_v58 = vshrl.u32 %v169_v57, 15 }
  0x37   :  { %v72_v13 = vmul.u32 2218838667, %v71_v12  ;;  %v121_v31 = vxor.u32 %v120_v30, %v119_v29  ;;  %v171_v59 = vxor.u32 %v170_v58, %v169_v57 }
  0x39   :  { %v73_v14 = vshrl.u32 %v72_v13, 16  ;;  %v122_v32 = vmul.u32 2218838667, %v121_v31  ;;  %v172_v60 = vmul.u32 2218838667, %v171_v59 }
  0x3b   :  { %v74_v15 = vxor.u32 %v73_v14, %v72_v13  ;;  %v123_v33 = vshrl.u32 %v122_v32, 16  ;;  %v173_v61 = vshrl.u32 %v172_v60, 16 }
  0x3d   :  { %v75_v16 = vand.u32 2147483520, %v74_v15  ;;  %v124_v35 = vxor.u32 %v123_v33, %v122_v32  ;;  %v174_v63 = vxor.u32 %v173_v61, %v172_v60 }
  0x3f   :  { %v76_v18 = vor.u32 %v75_v16, %v544_v1  ;;  %v125_v40 = vand.u32 2147483520, %v124_v35  ;;  %v175_v5 = vand.u32 2147483520, %v174_v63 }
  0x41   :  { %v77_v19 = vor.u32 %v76_v18, %v55_v17  ;;  %v126_v43 = vor.u32 %v125_v40, %v544_v1  ;;  %v176_v9 = vor.u32 %v175_v5, %v544_v1 }
  0x43   :  { %v79_v20 = vshra.s32 %v77_v19, 16  ;;  %v78_v22 = vand.u32 65535, %v77_v19  ;;  %v216_v19 = vadd.s32 3668340011, %v550_v7 }
  0x45   :  { %v81_v21 = vcvt.s32.f32 %v79_v20  ;;  %v80_v23 = vcvt.s32.f32 %v78_v22  ;;  %v217_v20 = vshrl.u32 %v216_v19, 16 }
  0x47   :  { %82 = vmax.xlane.f32.xlu0 %v81_v21 }
  0xd0   :  { %v83_v24 = vpop.xlane.xlu0 %82 }
  0xd1   :  { %vm84_vm0 = vcmp.eq.f32.partialorder %v81_v21, %v83_v24  ;;  %v89_v34 = vcvt.f32.s32 %v83_v24  ;;  %v218_v21 = vxor.u32 %v217_v20, %v216_v19 }
  0xd2   :  { %v85_v25 = vsel %vm84_vm0, %v80_v23, -inf }
  0xd3   :  { %86 = vmax.xlane.f32.xlu0 %v85_v25  ;;  %v90_v37 = vshll.u32 %v89_v34, 16  ;;  %v219_v22 = vmul.u32 2146121005, %v218_v21 }
  0xd5   :  { %v220_v23 = vshrl.u32 %v219_v22, 15 }
  0xd7   :  { %v221_v24 = vxor.u32 %v220_v23, %v219_v22 }
  0xd9   :  { %v222_v25 = vmul.u32 2218838667, %v221_v24 }
  0xdb   :  { %v223_v26 = vshrl.u32 %v222_v25, 16 }
  0xdd   :  { %v224_v28 = vxor.u32 %v223_v26, %v222_v25 }
  0xdf   :  { %v225_v33 = vand.u32 2147483520, %v224_v28 }
 0x15c   :  { %v87_v36 = vpop.xlane.xlu0 %86 }
 0x15d   :  { %v88_v38 = vcvt.f32.s32 %v87_v36  ;;  %v226_v36 = vor.u32 %v225_v33, %v544_v1 }
 0x15f   :  { %v91_v39 = vadd.s32 %v90_v37, %v88_v38 }
 0x161   :  { %v92_v41 = vand.u32 127, %v91_v39 }
 0x163   :  { %vm557_vm1 = vcmp.eq.s32.totalorder %v544_v1, %v92_v41 }
 0x164   :  { %v113_v45 = vsel %vm557_vm1, 4294967295, %v508_v44 }
 0x165   :  { %v114_v46 = vor.u32 %v113_v45, %v55_v17 }
 0x167   :  { %v127_v47 = vor.u32 %v126_v43, %v114_v46 }
 0x169   :  { %v129_v48 = vshra.s32 %v127_v47, 16  ;;  %v128_v50 = vand.u32 65535, %v127_v47 }
 0x16b   :  { %v131_v49 = vcvt.s32.f32 %v129_v48  ;;  %v130_v52 = vcvt.s32.f32 %v128_v50  ;;  %v266_v48 = vadd.s32 2027808484, %v550_v7 }
 0x16d   :  { %132 = vmax.xlane.f32.xlu1 %v131_v49 }
 0x1f6   :  { %v133_v51 = vpop.xlane.xlu1 %132 }
 0x1f7   :  { %vm134_vm2 = vcmp.eq.f32.partialorder %v131_v49, %v133_v51  ;;  %v139_v62 = vcvt.f32.s32 %v133_v51  ;;  %v267_v49 = vshrl.u32 %v266_v48, 16 }
 0x1f8   :  { %v135_v53 = vsel %vm134_vm2, %v130_v52, -inf }
 0x1f9   :  { %136 = vmax.xlane.f32.xlu1 %v135_v53  ;;  %v140_v2 = vshll.u32 %v139_v62, 16  ;;  %v268_v50 = vxor.u32 %v267_v49, %v266_v48 }
 0x1fb   :  { %v269_v51 = vmul.u32 2146121005, %v268_v50 }
 0x1fd   :  { %v270_v52 = vshrl.u32 %v269_v51, 15 }
 0x1ff   :  { %v271_v53 = vxor.u32 %v270_v52, %v269_v51 }
 0x201   :  { %v272_v54 = vmul.u32 2218838667, %v271_v53 }
 0x203   :  { %v273_v55 = vshrl.u32 %v272_v54, 16 }
 0x205   :  { %v274_v57 = vxor.u32 %v273_v55, %v272_v54 }
 0x207   :  { %v275_v62 = vand.u32 2147483520, %v274_v57 }
 0x282   :  { %v137_v0 = vpop.xlane.xlu1 %136 }
 0x283   :  { %v138_v3 = vcvt.f32.s32 %v137_v0 }
 0x285   :  { %v141_v4 = vadd.s32 %v140_v2, %v138_v3  ;;  %v276_v2 = vor.u32 %v275_v62, %v544_v1 }
 0x287   :  { %v142_v6 = vand.u32 127, %v141_v4 }
 0x289   :  { %vm567_vm3 = vcmp.eq.s32.totalorder %v544_v1, %v142_v6 }
 0x28a   :  { %v163_v10 = vsel %vm567_vm3, 4294967295, %v508_v44 }
 0x28b   :  { %v164_v11 = vor.u32 %v163_v10, %v114_v46 }
 0x28d   :  { %v177_v12 = vor.u32 %v176_v9, %v164_v11 }
 0x28f   :  { %v179_v13 = vshra.s32 %v177_v12, 16  ;;  %v178_v15 = vand.u32 65535, %v177_v12 }
 0x291   :  { %v181_v14 = vcvt.s32.f32 %v179_v13  ;;  %v180_v17 = vcvt.s32.f32 %v178_v15 }
 0x293   :  { %182 = vmax.xlane.f32.xlu0 %v181_v14 }
 0x31c   :  { %v183_v16 = vpop.xlane.xlu0 %182 }
 0x31d   :  { %vm184_vm4 = vcmp.eq.f32.partialorder %v181_v14, %v183_v16  ;;  %v189_v27 = vcvt.f32.s32 %v183_v16  ;;  %v316_v14 = vadd.s32 387276957, %v550_v7 }
 0x31e   :  { %v185_v18 = vsel %vm184_vm4, %v180_v17, -inf }
 0x31f   :  { %186 = vmax.xlane.f32.xlu1 %v185_v18  ;;  %v190_v30 = vshll.u32 %v189_v27, 16  ;;  %v317_v15 = vshrl.u32 %v316_v14, 16 }
 0x321   :  { %v318_v16 = vxor.u32 %v317_v15, %v316_v14 }
 0x323   :  { %v319_v17 = vmul.u32 2146121005, %v318_v16 }
 0x325   :  { %v320_v18 = vshrl.u32 %v319_v17, 15 }
 0x327   :  { %v321_v19 = vxor.u32 %v320_v18, %v319_v17 }
 0x329   :  { %v322_v20 = vmul.u32 2218838667, %v321_v19  ;;  %v54_v19 = vld [vmem:[#allocation6] sm:$0xff] }
 0x32b   :  { %v323_v21 = vshrl.u32 %v322_v20, 16 }
 0x32d   :  { %v324_v23 = vxor.u32 %v323_v21, %v322_v20 }
 0x32f   :  { %v325_v28 = vand.u32 2147483520, %v324_v23 }
 0x3a8   :  { %v187_v29 = vpop.xlane.xlu1 %186 }
 0x3a9   :  { %v188_v31 = vcvt.f32.s32 %v187_v29 }
 0x3ab   :  { %v191_v32 = vadd.s32 %v190_v30, %v188_v31  ;;  %v326_v31 = vor.u32 %v325_v28, %v544_v1 }
 0x3ad   :  { %v192_v34 = vand.u32 127, %v191_v32 }
 0x3af   :  { %vm577_vm5 = vcmp.eq.s32.totalorder %v544_v1, %v192_v34 }
 0x3b0   :  { %v213_v37 = vsel %vm577_vm5, 4294967295, %v508_v44 }
 0x3b1   :  { %v214_v38 = vor.u32 %v213_v37, %v164_v11 }
 0x3b3   :  { %v227_v39 = vor.u32 %v226_v36, %v214_v38 }
 0x3b5   :  { %v229_v40 = vshra.s32 %v227_v39, 16  ;;  %v228_v43 = vand.u32 65535, %v227_v39 }
 0x3b7   :  { %v231_v41 = vcvt.s32.f32 %v229_v40  ;;  %v230_v46 = vcvt.s32.f32 %v228_v43  ;;  %v366_v43 = vadd.s32 3041712726, %v550_v7 }
 0x3b9   :  { %232 = vmax.xlane.f32.xlu0 %v231_v41 }
 0x442   :  { %v233_v45 = vpop.xlane.xlu0 %232 }
 0x443   :  { %vm234_vm6 = vcmp.eq.f32.partialorder %v231_v41, %v233_v45  ;;  %v239_v56 = vcvt.f32.s32 %v233_v45  ;;  %v367_v45 = vshrl.u32 %v366_v43, 16 }
 0x444   :  { %v235_v47 = vsel %vm234_vm6, %v230_v46, -inf }
 0x445   :  { %236 = vmax.xlane.f32.xlu1 %v235_v47  ;;  %v240_v59 = vshll.u32 %v239_v56, 16  ;;  %v368_v46 = vxor.u32 %v367_v45, %v366_v43 }
 0x447   :  { %v369_v47 = vmul.u32 2146121005, %v368_v46 }
 0x449   :  { %v370_v48 = vshrl.u32 %v369_v47, 15 }
 0x44b   :  { %v371_v49 = vxor.u32 %v370_v48, %v369_v47 }
 0x44d   :  { %v372_v50 = vmul.u32 2218838667, %v371_v49 }
 0x44f   :  { %v373_v51 = vshrl.u32 %v372_v50, 16 }
 0x451   :  { %v374_v53 = vxor.u32 %v373_v51, %v372_v50 }
 0x4ce   :  { %v237_v58 = vpop.xlane.xlu1 %236 }
 0x4cf   :  { %v238_v60 = vcvt.f32.s32 %v237_v58  ;;  %v375_v58 = vand.u32 2147483520, %v374_v53 }
 0x4d1   :  { %v241_v61 = vadd.s32 %v240_v59, %v238_v60  ;;  %v376_v7 = vor.u32 %v375_v58, %v544_v1 }
 0x4d3   :  { %v242_v63 = vand.u32 127, %v241_v61 }
 0x4d5   :  { %vm587_vm7 = vcmp.eq.s32.totalorder %v544_v1, %v242_v63 }
 0x4d6   :  { %v263_v3 = vsel %vm587_vm7, 4294967295, %v508_v44 }
 0x4d7   :  { %v264_v4 = vor.u32 %v263_v3, %v214_v38 }
 0x4d9   :  { %v277_v5 = vor.u32 %v276_v2, %v264_v4 }
 0x4db   :  { %v279_v6 = vshra.s32 %v277_v5, 16  ;;  %v278_v10 = vand.u32 65535, %v277_v5  ;;  %v509_v5 = vmov 0.0  }
 0x4dd   :  { %v281_v9 = vcvt.s32.f32 %v279_v6  ;;  %v280_v12 = vcvt.s32.f32 %v278_v10  ;;  %v94_v6 = vsel %vm557_vm1, 1.0, %v509_v5  ;;  %v144_v10 = vsel %vm567_vm3, 1.0, %v509_v5 }
 0x4de   :  { %v98_v20 = vmul.f32 %v94_v6, %v54_v19  ;;  %v148_v21 = vmul.f32 %v144_v10, %v54_v19 }
 0x4df   :  { %282 = vmax.xlane.f32.xlu0 %v281_v9 }
 0x568   :  { %v283_v11 = vpop.xlane.xlu0 %282 }
 0x569   :  { %vm284_vm8 = vcmp.eq.f32.partialorder %v281_v9, %v283_v11  ;;  %v289_v22 = vcvt.f32.s32 %v283_v11 }
 0x56a   :  { %v285_v13 = vsel %vm284_vm8, %v280_v12, -inf }
 0x56b   :  { %286 = vmax.xlane.f32.xlu1 %v285_v13  ;;  %v290_v25 = vshll.u32 %v289_v22, 16  ;;  %v244_v13 = vsel %vm587_vm7, 1.0, %v509_v5 }
 0x56c   :  { %v248_v23 = vmul.f32 %v244_v13, %v54_v19 }
 0x5f4   :  { %v287_v24 = vpop.xlane.xlu1 %286 }
 0x5f5   :  { %v288_v26 = vcvt.f32.s32 %v287_v24 }
 0x5f7   :  { %v291_v27 = vadd.s32 %v290_v25, %v288_v26 }
 0x5f9   :  { %v292_v29 = vand.u32 127, %v291_v27 }
 0x5fb   :  { %vm597_vm9 = vcmp.eq.s32.totalorder %v544_v1, %v292_v29 }
 0x5fc   :  { %v313_v32 = vsel %vm597_vm9, 4294967295, %v508_v44  ;;  %v294_v14 = vsel %vm597_vm9, 1.0, %v509_v5 }
 0x5fd   :  { %v314_v33 = vor.u32 %v313_v32, %v264_v4  ;;  %v615_v4 = vld [vmem:[#allocation4] sm:$0xff]  ;;  %v298_v24 = vmul.f32 %v294_v14, %v54_v19 }
 0x5fe   :  { %v95_v9 = vmul.f32 %v94_v6, %v615_v4  ;;  %v145_v11 = vmul.f32 %v144_v10, %v615_v4  ;;  %v245_v42 = vmul.f32 %v244_v13, %v615_v4  ;;  %v295_v8 = vmul.f32 %v294_v14, %v615_v4 }
 0x5ff   :  { %v327_v34 = vor.u32 %v326_v31, %v314_v33 }
 0x601   :  { %v329_v36 = vshra.s32 %v327_v34, 16  ;;  %v328_v38 = vand.u32 65535, %v327_v34 }
 0x603   :  { %v331_v37 = vcvt.s32.f32 %v329_v36  ;;  %v330_v40 = vcvt.s32.f32 %v328_v38 }
 0x605   :  { %332 = vmax.xlane.f32.xlu0 %v331_v37 }
 0x68e   :  { %v333_v39 = vpop.xlane.xlu0 %332 }
 0x68f   :  { %vm334_vm10 = vcmp.eq.f32.partialorder %v331_v37, %v333_v39  ;;  %v339_v52 = vcvt.f32.s32 %v333_v39 }
 0x690   :  { %v335_v41 = vsel %vm334_vm10, %v330_v40, -inf }
 0x691   :  { %336 = vmax.xlane.f32.xlu1 %v335_v41  ;;  %v340_v55 = vshll.u32 %v339_v52, 16 }
 0x71a   :  { %v337_v54 = vpop.xlane.xlu1 %336 }
 0x71b   :  { %v338_v56 = vcvt.f32.s32 %v337_v54 }
 0x71d   :  { %v341_v57 = vadd.s32 %v340_v55, %v338_v56 }
 0x71f   :  { %v342_v59 = vand.u32 127, %v341_v57 }
 0x721   :  { %vm607_vm11 = vcmp.eq.s32.totalorder %v544_v1, %v342_v59 }
 0x722   :  { %v363_v61 = vsel %vm607_vm11, 4294967295, %v508_v44  ;;  %v194_v44 = vsel %vm577_vm5, 1.0, %v509_v5  ;;  %v344_v15 = vsel %vm607_vm11, 1.0, %v509_v5 }
 0x723   :  { %v364_v62 = vor.u32 %v363_v61, %v314_v33  ;;  %v195_v12 = vmul.f32 %v194_v44, %v615_v4  ;;  %v345_v35 = vmul.f32 %v344_v15, %v615_v4  ;;  %v198_v22 = vmul.f32 %v194_v44, %v54_v19 }
 0x724   :  { %v348_v25 = vmul.f32 %v344_v15, %v54_v19 }
 0x725   :  { %v377_v63 = vor.u32 %v376_v7, %v364_v62 }
 0x727   :  { %v379_v2 = vshra.s32 %v377_v63, 16  ;;  %v378_v16 = vand.u32 65535, %v377_v63 }
 0x729   :  { %v381_v3 = vcvt.s32.f32 %v379_v2  ;;  %v380_v0 = vcvt.s32.f32 %v378_v16 }
 0x72b   :  { %382 = vmax.xlane.f32.xlu0 %v381_v3 }
 0x72f   :  { %96 = vadd.xlane.f32.xlu0 %v95_v9 }
 0x733   :  { %146 = vadd.xlane.f32.xlu0 %v145_v11 }
 0x737   :  { %196 = vadd.xlane.f32.xlu0 %v195_v12 }
 0x73b   :  { %246 = vadd.xlane.f32.xlu0 %v245_v42 }
 0x73f   :  { %296 = vadd.xlane.f32.xlu0 %v295_v8 }
 0x743   :  { %346 = vadd.xlane.f32.xlu0 %v345_v35 }
 0x7b4   :  { %v383_v17 = vpop.xlane.xlu0 %382 }
 0x7b5   :  { %vm384_vm12 = vcmp.eq.f32.partialorder %v381_v3, %v383_v17  ;;  %v389_v26 = vcvt.f32.s32 %v383_v17 }
 0x7b6   :  { %v385_v18 = vsel %vm384_vm12, %v380_v0, -inf  ;;  %vm414_vm12 = vcmask 7168  }
 0x7b7   :  { %386 = vmax.xlane.f32.xlu1 %v385_v18  ;;  %v390_v28 = vshll.u32 %v389_v26, 16 }
 0x7b8   :  { %v97_v37 = vpop.xlane.xlu0 %96 }
 0x7b9   :  { %v101_v51 = vsub.f32 %v97_v37, %v615_v4 }
 0x7bb   :  { %99 = vadd.xlane.f32.xlu1 %v98_v20  ;;  %v102_v7 = vmul.f32 %v101_v51, %v101_v51 }
 0x7bc   :  { %v147_v39 = vpop.xlane.xlu0 %146 }
 0x7bd   :  { %v151_v50 = vsub.f32 %v147_v39, %v97_v37 }
 0x7bf   :  { %149 = vadd.xlane.f32.xlu1 %v148_v21  ;;  %v152_v57 = vmul.f32 %v151_v50, %v151_v50 }
 0x7c0   :  { %v197_v41 = vpop.xlane.xlu0 %196 }
 0x7c1   :  { %v201_v52 = vsub.f32 %v197_v41, %v147_v39 }
 0x7c3   :  { %199 = vadd.xlane.f32.xlu1 %v198_v22  ;;  %v202_v61 = vmul.f32 %v201_v52, %v201_v52 }
 0x7c4   :  { %v247_v45 = vpop.xlane.xlu0 %246 }
 0x7c5   :  { %v251_v58 = vsub.f32 %v247_v45, %v197_v41 }
 0x7c7   :  { %249 = vadd.xlane.f32.xlu1 %v248_v23  ;;  %v252_v9 = vmul.f32 %v251_v58, %v251_v58 }
 0x7c8   :  { %v297_v48 = vpop.xlane.xlu0 %296 }
 0x7c9   :  { %v301_v63 = vsub.f32 %v297_v48, %v247_v45 }
 0x7cb   :  { %299 = vadd.xlane.f32.xlu1 %v298_v24  ;;  %v302_v44 = vmul.f32 %v301_v63, %v301_v63 }
 0x7cc   :  { %v347_v62 = vpop.xlane.xlu0 %346 }
 0x7cd   :  { %v351_v10 = vsub.f32 %v347_v62, %v297_v48 }
 0x7cf   :  { %349 = vadd.xlane.f32.xlu1 %v348_v25  ;;  %v352_v42 = vmul.f32 %v351_v10, %v351_v10 }
 0x840   :  { %v387_v27 = vpop.xlane.xlu1 %386 }
 0x841   :  { %v388_v29 = vcvt.f32.s32 %v387_v27 }
 0x843   :  { %v391_v30 = vadd.s32 %v390_v28, %v388_v29 }
 0x844   :  { %v100_v36 = vpop.xlane.xlu1 %99 }
 0x845   :  { %v392_v31 = vand.u32 127, %v391_v30  ;;  %v103_v49 = vsub.f32 %v100_v36, %v54_v19 }
 0x847   :  { %vm393_vm13 = vcmp.eq.s32.totalorder %v544_v1, %v392_v31  ;;  %v104_v55 = vmul.f32 %v103_v49, %v103_v49 }
 0x848   :  { %v394_v32 = vsel %vm393_vm13, 1.0, %v509_v5  ;;  %v150_v38 = vpop.xlane.xlu1 %149 }
 0x849   :  { %v398_v33 = vmul.f32 %v394_v32, %v54_v19  ;;  %v395_v34 = vmul.f32 %v394_v32, %v615_v4  ;;  %v153_v47 = vsub.f32 %v150_v38, %v100_v36  ;;  %v105_v6 = vadd.f32 %v104_v55, %v102_v7 }
 0x84b   :  { %399 = vadd.xlane.f32.xlu1 %v398_v33  ;;  %396 = vadd.xlane.f32.xlu0 %v395_v34  ;;  %v154_v53 = vmul.f32 %v153_v47, %v153_v47  ;;  %vm108_vm15 = vcmp.eq.f32.partialorder %v105_v6, inf  ;;  %v111_v36 = vand.u32 2147483648, %v105_v6  ;;  %vm110_vm3 = vcmp.eq.f32.partialorder %v105_v6, 0.0 }
 0x84c   :  { %v200_v40 = vpop.xlane.xlu1 %199 }
 0x84d   :  { %v203_v1 = vsub.f32 %v200_v40, %v150_v38  ;;  %v155_v2 = vadd.f32 %v154_v53, %v152_v57 }
 0x84f   :  { %v204_v59 = vmul.f32 %v203_v1, %v203_v1  ;;  %427 = vrsqrt.f32 %v155_v2  ;;  %vm158_vm14 = vcmp.eq.f32.partialorder %v155_v2, inf  ;;  %v161_v31 = vand.u32 2147483648, %v155_v2 }
 0x850   :  { %v250_v43 = vpop.xlane.xlu1 %249  ;;  %429 = vrsqrt.f32 %v105_v6  ;;  %vm160_vm1 = vcmp.eq.f32.partialorder %v155_v2, 0.0 }
 0x851   :  { %v253_v54 = vsub.f32 %v250_v43, %v200_v40  ;;  %v205_v4 = vadd.f32 %v204_v59, %v202_v61 }
 0x853   :  { %v254_v3 = vmul.f32 %v253_v54, %v253_v54  ;;  %431 = vrsqrt.f32 %v205_v4  ;;  %vm208_vm0 = vcmp.eq.f32.partialorder %v205_v4, inf  ;;  %v211_v38 = vand.u32 2147483648, %v205_v4 }
 0x854   :  { %v300_v46 = vpop.xlane.xlu1 %299  ;;  %vm210_vm4 = vcmp.eq.f32.partialorder %v205_v4, 0.0 }
 0x855   :  { %v303_v60 = vsub.f32 %v300_v46, %v250_v43  ;;  %v255_v12 = vadd.f32 %v254_v3, %v252_v9 }
 0x857   :  { %v304_v11 = vmul.f32 %v303_v60, %v303_v60  ;;  %433 = vrsqrt.f32 %v255_v12  ;;  %vm258_vm2 = vcmp.eq.f32.partialorder %v255_v12, inf  ;;  %v261_v45 = vand.u32 2147483648, %v255_v12 }
 0x858   :  { %v350_v56 = vpop.xlane.xlu1 %349  ;;  %vm260_vm6 = vcmp.eq.f32.partialorder %v255_v12, 0.0 }
 0x859   :  { %v353_v5 = vsub.f32 %v350_v56, %v300_v46  ;;  %v305_v14 = vadd.f32 %v304_v11, %v302_v44 }
 0x85b   :  { %v354_v13 = vmul.f32 %v353_v5, %v353_v5  ;;  %435 = vrsqrt.f32 %v305_v14  ;;  %vm308_vm5 = vcmp.eq.f32.partialorder %v305_v14, inf  ;;  %v311_v49 = vand.u32 2147483648, %v305_v14 }
 0x85c   :  { %v428_v0 = vpop.eup %427  ;;  %vm310_vm8 = vcmp.eq.f32.partialorder %v305_v14, 0.0 }
 0x85d   :  { %v355_v8 = vadd.f32 %v354_v13, %v352_v42  ;;  %v430_v18 = vpop.eup %429  ;;  %v157_v22 = vmul.f32 %v428_v0, %v155_v2 }
 0x85e   :  { %v107_v25 = vmul.f32 %v430_v18, %v105_v6 }
 0x85f   :  { %437 = vrsqrt.f32 %v355_v8  ;;  %v159_v28 = vsel %vm158_vm14, %v155_v2, %v157_v22  ;;  %vm358_vm7 = vcmp.eq.f32.partialorder %v355_v8, inf  ;;  %v361_v52 = vand.u32 2147483648, %v355_v8 }
 0x860   :  { %v432_v21 = vpop.eup %431  ;;  %v109_v32 = vsel %vm108_vm15, %v105_v6, %v107_v25  ;;  %v162_v37 = vsel %vm160_vm1, %v161_v31, %v159_v28  ;;  %vm360_vm9 = vcmp.eq.f32.partialorder %v355_v8, 0.0 }
 0x861   :  { %v207_v26 = vmul.f32 %v432_v21, %v205_v4  ;;  %v112_v41 = vsel %vm110_vm3, %v111_v36, %v109_v32 }
 0x862   :  { %v165_v46 = vadd.f32 %v162_v37, %v112_v41 }
 0x863   :  { %v209_v33 = vsel %vm208_vm0, %v205_v4, %v207_v26 }
 0x864   :  { %v434_v24 = vpop.eup %433  ;;  %v212_v43 = vsel %vm210_vm4, %v211_v38, %v209_v33 }
 0x865   :  { %v257_v29 = vmul.f32 %v434_v24, %v255_v12  ;;  %v215_v50 = vadd.f32 %v212_v43, %v165_v46 }
 0x867   :  { %v259_v39 = vsel %vm258_vm2, %v255_v12, %v257_v29 }
 0x868   :  { %v436_v27 = vpop.eup %435  ;;  %v262_v48 = vsel %vm260_vm6, %v261_v45, %v259_v39 }
 0x869   :  { %v307_v34 = vmul.f32 %v436_v27, %v305_v14  ;;  %v265_v53 = vadd.f32 %v262_v48, %v215_v50 }
 0x86b   :  { %v309_v47 = vsel %vm308_vm5, %v305_v14, %v307_v34 }
 0x86c   :  { %v438_v30 = vpop.eup %437  ;;  %v312_v51 = vsel %vm310_vm8, %v311_v49, %v309_v47 }
 0x86d   :  { %v357_v40 = vmul.f32 %v438_v30, %v355_v8 }
 0x86f   :  { %v359_v1 = vsel %vm358_vm7, %v355_v8, %v357_v40 }
 0x870   :  { %v362_v55 = vsel %vm360_vm9, %v361_v52, %v359_v1 }
 0x8d4   :  { %v400_v15 = vpop.xlane.xlu1 %399  ;;  %v397_v35 = vpop.xlane.xlu0 %396 }
 0x8d5   :  { %v403_v16 = vsub.f32 %v400_v15, %v350_v56  ;;  %v401_v17 = vsub.f32 %v397_v35, %v347_v62  ;;  %v315_v56 = vadd.f32 %v312_v51, %v265_v53 }
 0x8d7   :  { %v404_v19 = vmul.f32 %v403_v16, %v403_v16  ;;  %v402_v20 = vmul.f32 %v401_v17, %v401_v17  ;;  %v365_v59 = vadd.f32 %v362_v55, %v315_v56 }
 0x8d9   :  { %v405_v23 = vadd.f32 %v404_v19, %v402_v20 }
 0x8db   :  { %439 = vrsqrt.f32 %v405_v23  ;;  %vm408_vm10 = vcmp.eq.f32.partialorder %v405_v23, inf  ;;  %v411_v58 = vand.u32 2147483648, %v405_v23  ;;  %vm410_vm11 = vcmp.eq.f32.partialorder %v405_v23, 0.0 }
 0x8e8   :  { %v440_v54 = vpop.eup %439 }
 0x8e9   :  { %v407_v57 = vmul.f32 %v440_v54, %v405_v23 }
 0x8eb   :  { %v409_v60 = vsel %vm408_vm10, %v405_v23, %v407_v57 }
 0x8ec   :  { %v412_v7 = vsel %vm410_vm11, %v411_v58, %v409_v60 }
 0x8ed   :  { %v413_v61 = vadd.f32 %v412_v7, %v365_v59 }
 0x8ef   :  { %415 = vst.msk [vmem:[%s645_s4] sm:$0xff] %vm414_vm12, %v413_v61 }
 0x8f0   :  { %420 = vsyncpa [#allocation5], 1 }
 0x8f1   :  { %421 = vsyncpa [#allocation7], 1 }

</bundles_post_ra>
